<compile_context>
chip_gen: v6e
topology: v6e:2x2x1
jax: 0.10.0
libtpu: 0.0.40
codegen_flags: <defaults>
</compile_context>

<pallas_src>
import jax
import jax.numpy as jnp
from jax.experimental import pallas as pl
from jax.experimental.pallas import tpu as pltpu

LN_EPS = 1e-12  # config.layer_norm_eps


def _make_kernel(add_summary):
    def kernel(*refs):
        if add_summary:
            (w_ref, pos_ref, tt_ids_ref, sm_ids_ref,
             tt_tab_ref, sm_tab_ref, gamma_ref, beta_ref, out_ref) = refs
        else:
            (w_ref, pos_ref, tt_ids_ref,
             tt_tab_ref, gamma_ref, beta_ref, out_ref) = refs
            sm_ids_ref = sm_tab_ref = None

        T = out_ref.shape[1]
        V = tt_tab_ref.shape[0]

        # Word + position contributions (f32 accumulation).
        w = w_ref[0].astype(jnp.float32)              # (T, H)
        p = pos_ref[...]
        if p.ndim == 3:                               # per-batch position slab
            p = p[0]
        p = p.astype(jnp.float32)                     # (T, H)

        # Tiny-table lookups via one-hot matmul on the (otherwise idle) MXU.
        lane_v = jax.lax.broadcasted_iota(jnp.int32, (T, V), 1)      # (T, V)
        tt_oh = (tt_ids_ref[0] == lane_v).astype(jnp.float32)        # (T, V)
        x = w + p + jnp.dot(tt_oh, tt_tab_ref[...].astype(jnp.float32),
                            preferred_element_type=jnp.float32)
        if add_summary:
            sm_oh = (sm_ids_ref[0] == lane_v).astype(jnp.float32)
            x = x + jnp.dot(sm_oh, sm_tab_ref[...].astype(jnp.float32),
                            preferred_element_type=jnp.float32)

        # LayerNorm over the hidden (lane) axis.
        mean = jnp.mean(x, axis=-1, keepdims=True)
        c = x - mean
        var = jnp.mean(c * c, axis=-1, keepdims=True)
        y = c * jax.lax.rsqrt(var + LN_EPS)
        y = y * gamma_ref[...] + beta_ref[...]        # (1, H) broadcasts
        out_ref[0] = y.astype(out_ref.dtype)

    return kernel


def _pick_block_size(seq_len):
    for t in (512, 256, 128, 64, 32, 16, 8):
        if seq_len % t == 0:
            return t
    return seq_len  # full-dim block (always a legal BlockSpec)


def custom_embedding_forward(params, input_ids=None, token_type_ids=None,
                             position_ids=None, inputs_embeds=None,
                             summary_ids=None, past_key_values_length=0):
    if input_ids is not None:
        B, S = input_ids.shape
    else:
        B, S = inputs_embeds.shape[:2]
    H = params["word"].shape[1]
    V = params["token_type"].shape[0]

    # --- Word embeddings: the only big data-dependent gather (wrapper-side). ---
    if inputs_embeds is None:
        w_slab = jnp.take(params["word"], input_ids.astype(jnp.int32), axis=0)
    else:
        w_slab = inputs_embeds                                    # (B, S, H)

    # --- Position embeddings: contiguous block fetch (shared across batch). ---
    pos_batched = False
    if position_ids is None:
        pos_rows = jax.lax.dynamic_slice_in_dim(
            params["position"], past_key_values_length, S, axis=0)  # (S, H)
    else:
        position_ids = jnp.asarray(position_ids, jnp.int32)
        if position_ids.ndim == 2 and position_ids.shape[0] == 1:
            position_ids = position_ids[0]
        pos_rows = jnp.take(params["position"], position_ids, axis=0)
        pos_batched = pos_rows.ndim == 3                          # (B, S, H)

    # --- Small-id streams (kept as (B, S, 1) int32, looked up in-kernel). ---
    if token_type_ids is None:
        token_type_ids = jnp.zeros((B, S), jnp.int32)
    tt_ids = token_type_ids.astype(jnp.int32).reshape(B, S, 1)

    add_summary = summary_ids is not None
    if add_summary:
        sm_ids = summary_ids.astype(jnp.int32).reshape(B, S, 1)

    gamma = params["ln_gamma"].reshape(1, H).astype(jnp.float32)
    beta = params["ln_beta"].reshape(1, H).astype(jnp.float32)
    tt_tab = params["token_type"].astype(jnp.float32)
    sm_tab = params["summary"].astype(jnp.float32)

    T = _pick_block_size(S)
    grid = (B, S // T)

    def bj_map(b, j): return (b, j, 0)
    def pos_shared_map(b, j): return (j, 0)
    def const_map(b, j): return (0, 0)

    in_specs = [pl.BlockSpec((1, T, H), bj_map)]          # gathered word slab
    inputs = [w_slab]
    if pos_batched:
        in_specs.append(pl.BlockSpec((1, T, H), bj_map))
    else:
        in_specs.append(pl.BlockSpec((T, H), pos_shared_map))
    inputs.append(pos_rows)

    in_specs.append(pl.BlockSpec((1, T, 1), bj_map)); inputs.append(tt_ids)
    if add_summary:
        in_specs.append(pl.BlockSpec((1, T, 1), bj_map)); inputs.append(sm_ids)

    in_specs.append(pl.BlockSpec((V, H), const_map)); inputs.append(tt_tab)
    if add_summary:
        in_specs.append(pl.BlockSpec((V, H), const_map)); inputs.append(sm_tab)

    in_specs.append(pl.BlockSpec((1, H), const_map)); inputs.append(gamma)
    in_specs.append(pl.BlockSpec((1, H), const_map)); inputs.append(beta)

    out = pl.pallas_call(
        _make_kernel(add_summary),
        out_shape=jax.ShapeDtypeStruct((B, S, H), jnp.float32),
        grid_spec=pltpu.PrefetchScalarGridSpec(
            num_scalar_prefetch=0,
            grid=grid,
            in_specs=in_specs,
            out_specs=pl.BlockSpec((1, T, H), bj_map),
        ),
        compiler_params=pltpu.CompilerParams(
            dimension_semantics=("parallel", "parallel")),
    )(*inputs)

    # TODO(synk): nn.Dropout is inference-mode identity here (no RNG mask applied).
    return out


def init_params(key, vocab_size, hidden_size, max_position_embeddings,
                type_vocab_size, pad_token_id):
    k1, k2, k3, k4, k5, k6 = jax.random.split(key, 6)
    word = 0.02 * jax.random.normal(k1, (vocab_size, hidden_size), jnp.float32)
    word = word.at[pad_token_id].set(0.0)                 # padding_idx row zeroed
    position = 0.02 * jax.random.normal(k2, (max_position_embeddings, hidden_size),
                                        jnp.float32)
    token_type = 0.02 * jax.random.normal(k3, (type_vocab_size, hidden_size),
                                          jnp.float32)
    summary = 0.02 * jax.random.normal(k4, (type_vocab_size, hidden_size),
                                       jnp.float32)
    summary = summary.at[pad_token_id].set(0.0)           # padding_idx row zeroed
    ln_gamma = 1.0 + 0.1 * jax.random.normal(k5, (hidden_size,), jnp.float32)
    ln_beta = 0.05 * jax.random.normal(k6, (hidden_size,), jnp.float32)
    return {
        "word": word, "position": position, "token_type": token_type,
        "summary": summary, "ln_gamma": ln_gamma, "ln_beta": ln_beta,
        "pad_token_id": pad_token_id,
    }


def _reference_forward(params, word_embeds, token_type_ids, position_ids,
                       summary_ids=None):
    t = jnp.take(params["token_type"], token_type_ids, axis=0)
    p = jnp.take(params["position"], position_ids, axis=0)
    x = word_embeds + t
    if summary_ids is not None:
        x = x + jnp.take(params["summary"], summary_ids, axis=0)
    x = x + p
    mean = jnp.mean(x, axis=-1, keepdims=True)
    var = jnp.mean((x - mean) ** 2, axis=-1, keepdims=True)
    xn = (x - mean) * jax.lax.rsqrt(var + LN_EPS)
    return xn * params["ln_gamma"] + params["ln_beta"]


if __name__ == "__main__":
    # Small config consistent with the module's __init__.
    vocab_size = 32
    hidden_size = 32
    max_position_embeddings = 64
    type_vocab_size = 4
    pad_token_id = 0
    B, S = 2, 8

    root = jax.random.PRNGKey(0)
    k_params, k_ids, k_sum, k_tt, k_emb = jax.random.split(root, 5)

    params = init_params(k_params, vocab_size, hidden_size,
                         max_position_embeddings, type_vocab_size, pad_token_id)

    input_ids = jax.random.randint(k_ids, (B, S), 0, vocab_size, dtype=jnp.int32)
    summary_ids = jax.random.randint(k_sum, (B, S), 0, type_vocab_size,
                                     dtype=jnp.int32)
    token_type_ids = jax.random.randint(k_tt, (B, S), 0, type_vocab_size,
                                        dtype=jnp.int32)

    tt_default = jnp.zeros((B, S), jnp.int32)
    pos_default = jnp.broadcast_to(jnp.arange(S, dtype=jnp.int32)[None, :], (B, S))
    word_gathered = jnp.take(params["word"], input_ids, axis=0)

    # Path 1: defaults + summary ids.
    out = custom_embedding_forward(params, input_ids, summary_ids=summary_ids)
    out = jax.block_until_ready(out)
    ref = _reference_forward(params, word_gathered, tt_default, pos_default,
                             summary_ids)
    assert out.shape == (B, S, hidden_size)
    assert jnp.allclose(out, ref, atol=2e-5, rtol=2e-5), "mismatch (with summary)"

    # Path 2: defaults, no summary ids (summary embeddings not added).
    out2 = custom_embedding_forward(params, input_ids)
    out2 = jax.block_until_ready(out2)
    ref2 = _reference_forward(params, word_gathered, tt_default, pos_default, None)
    assert jnp.allclose(out2, ref2, atol=2e-5, rtol=2e-5), "mismatch (no summary)"

    # Path 3: past_key_values_length offset on the default position buffer.
    pkv = 4
    out3 = custom_embedding_forward(params, input_ids, summary_ids=summary_ids,
                                    past_key_values_length=pkv)
    out3 = jax.block_until_ready(out3)
    ref3 = _reference_forward(params, word_gathered, tt_default,
                              pos_default + pkv, summary_ids)
    assert jnp.allclose(out3, ref3, atol=2e-5, rtol=2e-5), "mismatch (pkv offset)"

    # Path 4: inputs_embeds + explicit per-batch position_ids + token_type_ids.
    inputs_embeds = 0.02 * jax.random.normal(k_emb, (B, S, hidden_size),
                                             jnp.float32)
    pos_ids = jnp.stack([jnp.arange(S, dtype=jnp.int32),
                         jnp.arange(S, dtype=jnp.int32) + 3])      # (B, S)
    out4 = custom_embedding_forward(params, token_type_ids=token_type_ids,
                                    position_ids=pos_ids,
                                    inputs_embeds=inputs_embeds,
                                    summary_ids=summary_ids)
    out4 = jax.block_until_ready(out4)
    ref4 = _reference_forward(params, inputs_embeds, token_type_ids, pos_ids,
                              summary_ids)
    assert jnp.allclose(out4, ref4, atol=2e-5, rtol=2e-5), "mismatch (embeds path)"

    print("KERNEL_OK")
</pallas_src>

<mosaic_0001>
module attributes {stable_mosaic.version = 11 : i64} {
  func.func @kernel(%arg0: i32, %arg1: i32, %arg2: memref<1x8x32xf32, #tpu.memory_space<vmem>>, %arg3: memref<8x32xf32, #tpu.memory_space<vmem>>, %arg4: memref<1x8x1xi32, #tpu.memory_space<vmem>>, %arg5: memref<1x8x1xi32, #tpu.memory_space<vmem>>, %arg6: memref<4x32xf32, #tpu.memory_space<vmem>>, %arg7: memref<4x32xf32, #tpu.memory_space<vmem>>, %arg8: memref<1x32xf32, #tpu.memory_space<vmem>>, %arg9: memref<1x32xf32, #tpu.memory_space<vmem>>, %arg10: memref<1x8x32xf32, #tpu.memory_space<vmem>>) attributes {dimension_semantics = [#tpu.dimension_semantics<parallel>, #tpu.dimension_semantics<parallel>], iteration_bounds = array<i64: 2, 1>, scalar_prefetch = 0 : i64, scratch_operands = 0 : i64, tpu.core_type = #tpu.core_type<tc>, window_params = [{transform_indices = @transform_0, window_bounds = array<i64: 1, 8, 32>}, {transform_indices = @transform_1, window_bounds = array<i64: 8, 32>}, {transform_indices = @transform_2, window_bounds = array<i64: 1, 8, 1>}, {transform_indices = @transform_3, window_bounds = array<i64: 1, 8, 1>}, {pipeline_mode = #tpu.pipeline_mode<synchronous>, transform_indices = @transform_4, window_bounds = array<i64: 4, 32>}, {pipeline_mode = #tpu.pipeline_mode<synchronous>, transform_indices = @transform_5, window_bounds = array<i64: 4, 32>}, {pipeline_mode = #tpu.pipeline_mode<synchronous>, transform_indices = @transform_6, window_bounds = array<i64: 1, 32>}, {pipeline_mode = #tpu.pipeline_mode<synchronous>, transform_indices = @transform_7, window_bounds = array<i64: 1, 32>}, {transform_indices = @transform_8, window_bounds = array<i64: 1, 8, 32>}]} {
    %c0 = arith.constant 0 : index
    %c0_0 = arith.constant 0 : index
    %c0_1 = arith.constant 0 : index
    %0 = vector.load %arg2[%c0, %c0_0, %c0_1] : memref<1x8x32xf32, #tpu.memory_space<vmem>>, vector<1x8x32xf32>
    %1 = vector.shape_cast %0 : vector<1x8x32xf32> to vector<8x32xf32>
    %c0_2 = arith.constant 0 : index
    %c0_3 = arith.constant 0 : index
    %2 = vector.load %arg3[%c0_2, %c0_3] : memref<8x32xf32, #tpu.memory_space<vmem>>, vector<8x32xf32>
    %3 = tpu.iota {dimensions = array<i32: 1>} : vector<8x4xi32>
    %c0_4 = arith.constant 0 : index
    %c0_5 = arith.constant 0 : index
    %c0_6 = arith.constant 0 : index
    %4 = vector.load %arg4[%c0_4, %c0_5, %c0_6] : memref<1x8x1xi32, #tpu.memory_space<vmem>>, vector<1x8x1xi32>
    %5 = vector.shape_cast %4 : vector<1x8x1xi32> to vector<8x1xi32>
    %6 = vector.broadcast %5 : vector<8x1xi32> to vector<8x4xi32>
    %7 = arith.cmpi eq, %6, %3 : vector<8x4xi32>
    %8 = arith.extui %7 : vector<8x4xi1> to vector<8x4xi32>
    %9 = arith.sitofp %8 : vector<8x4xi32> to vector<8x4xf32>
    %10 = arith.addf %1, %2 : vector<8x32xf32>
    %c0_7 = arith.constant 0 : index
    %c0_8 = arith.constant 0 : index
    %11 = vector.load %arg6[%c0_7, %c0_8] : memref<4x32xf32, #tpu.memory_space<vmem>>, vector<4x32xf32>
    %cst = arith.constant dense<0.000000e+00> : vector<8x32xf32>
    %12 = tpu.matmul %9, %11, %cst {dimension_numbers = #tpu.dot_dimension_numbers<[1], [0], [0], [1], [0, 0, 1, 1], [], []>} : vector<8x4xf32>, vector<4x32xf32>, vector<8x32xf32> -> vector<8x32xf32>
    %13 = arith.addf %10, %12 : vector<8x32xf32>
    %c0_9 = arith.constant 0 : index
    %c0_10 = arith.constant 0 : index
    %c0_11 = arith.constant 0 : index
    %14 = vector.load %arg5[%c0_9, %c0_10, %c0_11] : memref<1x8x1xi32, #tpu.memory_space<vmem>>, vector<1x8x1xi32>
    %15 = vector.shape_cast %14 : vector<1x8x1xi32> to vector<8x1xi32>
    %16 = vector.broadcast %15 : vector<8x1xi32> to vector<8x4xi32>
    %17 = arith.cmpi eq, %16, %3 : vector<8x4xi32>
    %18 = arith.extui %17 : vector<8x4xi1> to vector<8x4xi32>
    %19 = arith.sitofp %18 : vector<8x4xi32> to vector<8x4xf32>
    %c0_12 = arith.constant 0 : index
    %c0_13 = arith.constant 0 : index
    %20 = vector.load %arg7[%c0_12, %c0_13] : memref<4x32xf32, #tpu.memory_space<vmem>>, vector<4x32xf32>
    %cst_14 = arith.constant dense<0.000000e+00> : vector<8x32xf32>
    %21 = tpu.matmul %19, %20, %cst_14 {dimension_numbers = #tpu.dot_dimension_numbers<[1], [0], [0], [1], [0, 0, 1, 1], [], []>} : vector<8x4xf32>, vector<4x32xf32>, vector<8x32xf32> -> vector<8x32xf32>
    %22 = arith.addf %13, %21 : vector<8x32xf32>
    %cst_15 = arith.constant dense<0.000000e+00> : vector<8xf32>
    %23 = vector.multi_reduction <add>, %22, %cst_15 [1] : vector<8x32xf32> to vector<8xf32>
    %24 = vector.shape_cast %23 : vector<8xf32> to vector<8x1xf32>
    %cst_16 = arith.constant 3.200000e+01 : f32
    %25 = vector.broadcast %cst_16 : f32 to vector<8x1xf32>
    %26 = arith.divf %24, %25 : vector<8x1xf32>
    %27 = vector.broadcast %26 : vector<8x1xf32> to vector<8x32xf32>
    %28 = arith.subf %22, %27 : vector<8x32xf32>
    %29 = arith.mulf %28, %28 : vector<8x32xf32>
    %cst_17 = arith.constant dense<0.000000e+00> : vector<8xf32>
    %30 = vector.multi_reduction <add>, %29, %cst_17 [1] : vector<8x32xf32> to vector<8xf32>
    %31 = vector.shape_cast %30 : vector<8xf32> to vector<8x1xf32>
    %cst_18 = arith.constant 3.200000e+01 : f32
    %32 = vector.broadcast %cst_18 : f32 to vector<8x1xf32>
    %33 = arith.divf %31, %32 : vector<8x1xf32>
    %cst_19 = arith.constant 9.99999996E-13 : f32
    %34 = vector.broadcast %cst_19 : f32 to vector<8x1xf32>
    %35 = arith.addf %33, %34 : vector<8x1xf32>
    %36 = math.rsqrt %35 : vector<8x1xf32>
    %37 = vector.broadcast %36 : vector<8x1xf32> to vector<8x32xf32>
    %38 = arith.mulf %28, %37 : vector<8x32xf32>
    %c0_20 = arith.constant 0 : index
    %c0_21 = arith.constant 0 : index
    %39 = vector.load %arg8[%c0_20, %c0_21] : memref<1x32xf32, #tpu.memory_space<vmem>>, vector<1x32xf32>
    %40 = vector.broadcast %39 : vector<1x32xf32> to vector<8x32xf32>
    %41 = arith.mulf %38, %40 : vector<8x32xf32>
    %c0_22 = arith.constant 0 : index
    %c0_23 = arith.constant 0 : index
    %42 = vector.load %arg9[%c0_22, %c0_23] : memref<1x32xf32, #tpu.memory_space<vmem>>, vector<1x32xf32>
    %43 = vector.broadcast %42 : vector<1x32xf32> to vector<8x32xf32>
    %44 = arith.addf %41, %43 : vector<8x32xf32>
    %c0_24 = arith.constant 0 : index
    %c0_25 = arith.constant 0 : index
    %c0_26 = arith.constant 0 : index
    %45 = vector.load %arg10[%c0_24, %c0_25, %c0_26] : memref<1x8x32xf32, #tpu.memory_space<vmem>>, vector<1x8x32xf32>
    %46 = vector.shape_cast %45 : vector<1x8x32xf32> to vector<8x32xf32>
    %47 = vector.shape_cast %44 : vector<8x32xf32> to vector<1x8x32xf32>
    tpu.vector_store %arg10[%c0_24, %c0_25, %c0_26], %47 {strides = array<i32>} : memref<1x8x32xf32, #tpu.memory_space<vmem>>, vector<1x8x32xf32>,
    return
  }
  func.func @transform_0(%arg0: i32, %arg1: i32) -> (i32, i32, i32) {
    %c0_i32 = arith.constant 0 : i32
    %c0_i32_0 = arith.constant 0 : i32
    return %arg0, %arg1, %c0_i32 : i32, i32, i32
  }
  func.func @transform_1(%arg0: i32, %arg1: i32) -> (i32, i32) {
    %c0_i32 = arith.constant 0 : i32
    %c0_i32_0 = arith.constant 0 : i32
    return %arg1, %c0_i32 : i32, i32
  }
  func.func @transform_2(%arg0: i32, %arg1: i32) -> (i32, i32, i32) {
    %c0_i32 = arith.constant 0 : i32
    %c0_i32_0 = arith.constant 0 : i32
    return %arg0, %arg1, %c0_i32 : i32, i32, i32
  }
  func.func @transform_3(%arg0: i32, %arg1: i32) -> (i32, i32, i32) {
    %c0_i32 = arith.constant 0 : i32
    %c0_i32_0 = arith.constant 0 : i32
    return %arg0, %arg1, %c0_i32 : i32, i32, i32
  }
  func.func @transform_4(%arg0: i32, %arg1: i32) -> (i32, i32) {
    %c0_i32 = arith.constant 0 : i32
    %c0_i32_0 = arith.constant 0 : i32
    %c0_i32_1 = arith.constant 0 : i32
    return %c0_i32, %c0_i32_0 : i32, i32
  }
  func.func @transform_5(%arg0: i32, %arg1: i32) -> (i32, i32) {
    %c0_i32 = arith.constant 0 : i32
    %c0_i32_0 = arith.constant 0 : i32
    %c0_i32_1 = arith.constant 0 : i32
    return %c0_i32, %c0_i32_0 : i32, i32
  }
  func.func @transform_6(%arg0: i32, %arg1: i32) -> (i32, i32) {
    %c0_i32 = arith.constant 0 : i32
    %c0_i32_0 = arith.constant 0 : i32
    %c0_i32_1 = arith.constant 0 : i32
    return %c0_i32, %c0_i32_0 : i32, i32
  }
  func.func @transform_7(%arg0: i32, %arg1: i32) -> (i32, i32) {
    %c0_i32 = arith.constant 0 : i32
    %c0_i32_0 = arith.constant 0 : i32
    %c0_i32_1 = arith.constant 0 : i32
    return %c0_i32, %c0_i32_0 : i32, i32
  }
  func.func @transform_8(%arg0: i32, %arg1: i32) -> (i32, i32, i32) {
    %c0_i32 = arith.constant 0 : i32
    %c0_i32_0 = arith.constant 0 : i32
    return %arg0, %arg1, %c0_i32 : i32, i32, i32
  }
}

</mosaic_0001>

<bundles_post_ra>
// kernel: tpu_custom_call.1
= control target key start
LH: loop header
LB: loop body
LE: loop exit
PB: predicated region body
PF: predicated region fallthrough
CT: control target
= control target key end

     0   :  { %s1086_s0 = inlined_call_operand.vmem [shape: f32[2,8,32], index: 0, kind: input, shape index: {}]   ;;  %s1087_s1 = inlined_call_operand.vmem [shape: f32[8,32], index: 1, kind: input, shape index: {}]   ;;  %s1088_s2 = inlined_call_operand.vmem [shape: s32[2,8,1], index: 2, kind: input, shape index: {}]   ;;  %s1089_s3 = inlined_call_operand.vmem [shape: s32[2,8,1], index: 3, kind: input, shape index: {}]   ;;  %s1090_s4 = inlined_call_operand.vmem [shape: f32[4,32], index: 4, kind: input, shape index: {}]   ;;  %s1091_s5 = inlined_call_operand.vmem [shape: f32[4,32], index: 5, kind: input, shape index: {}]   ;;  %s1092_s6 = inlined_call_operand.vmem [shape: f32[1,32], index: 6, kind: input, shape index: {}]   ;;  %s1093_s7 = inlined_call_operand.vmem [shape: f32[1,32], index: 7, kind: input, shape index: {}]   ;;  %s1094_s8 = inlined_call_operand.hbm [shape: f32[2,8,32], index: 8, kind: output, shape index: {}]  }
   0x1   :  { %1095 = sst [smem:[#allocation5_spill]] %s1086_s0 }
   0x2   :  { %13 = vsyncpa [#allocation3], 0 }
   0x3   :  { %15 = vsyncpa [#allocation3 + $0x1], 0  ;;  %s963_s27 = smov 0   ;;  %s965_s28 = smov 0  }
   0x4   :  { %s967_s29 = smov 0   ;;  %s969_s30 = smov 0  }
   0x5   :  { %s971_s9 = smov 0   ;;  %s973_s10 = smov 0  }
   0x6 LB: > { %s739_s11 = sadd.s32 4294967295, %s912_s10   ;;  %s740_s12 = sadd.s32 4294967294, %s912_s10   ;;  %s912_s10 = sphi %s973_s10, %s21_s10   ;;  %s908_s9 = sphi %s971_s9, %s1103_s9   ;;  %s904_s30 = sphi %s969_s30, %s1102_s30   ;;  %s900_s29 = sphi %s967_s29, %s1101_s29   ;;  %s896_s28 = sphi %s965_s28, %s1100_s28   ;;  %s892_s27 = sphi %s963_s27, %s1099_s27  }
   0x7   : > { %s33_s13 = sadd.s32 1, %s908_s9  ;;  %s236_s14 = sadd.s32 1, %s900_s29 }
   0x8   : > { %p35_p0 = scmp.ge.s32.totalorder %s33_s13, 2  ;;  %p246_p1 = scmp.ne.s32.totalorder %s900_s29, %s896_s28 }
   0x9   : > { %p247_p2 = scmp.eq.s32.totalorder %s739_s11, 1  ;;  %p252_p3 = scmp.ne.s32.totalorder %s896_s28, %s892_s27 }
   0xa   : > { %s1105_s13 = smov (%p35_p0, %s33_s13), 0  ;;  %p253_p5 = scmp.eq.s32.totalorder %s740_s12, 1 }
   0xb   : > { %p1003_p4 = por %p247_p2, %p246_p1  ;;  %s231_s16 = ssub.s32 %s908_s9, %s1105_s13 }
   0xc   : > { %p744_p6 = scmp.ge.s32.totalorder %s912_s10, 1  ;;  %p234_p7 = scmp.eq.s32.totalorder %s231_s16, 0 }
   0xd   : > { %p1010_p8 = por %p253_p5, %p252_p3  ;;  %p320_p9 = scmp.lt.s32.totalorder %s912_s10, 3 }
   0xe   : > { %s1016_s18 = scalar_select %p234_p7, %s900_s29, %s236_s14  }
   0xf   : > { %p321_p10 = pnand %p744_p6, %p320_p9 }
  0x10   : > { %p374_p11 = scmp.lt.s32.totalorder (!%p321_p10), %s904_s30, 1  ;;  %s1098_s0 = sld [smem:[#allocation5_spill]] (!%p321_p10) }
  0x11   : > { %324 = sbr.rel (%p321_p10) target bundleno = 673 (0x2a1), region = 52  ;;  %s758_s16 = sshll.u32 (!%p321_p10), %s904_s30, 7 }
  0x12   : > { %s621_s24 = scalar_lea.hbm (!%p321_p10), %s1094_s8, %s758_s16  ;;  %s917_s11 = smov (!%p321_p10), [#allocation2]  }
  0x16   : > { %v914_v0 = vmov 0   ;;  %v915_v1 = vmov 0.0   ;;  %s375_s19 = scalar_select %p374_p11, %s904_s30, 1  ;;  %v411_v2 = vld [vmem:[%s1090_s4] sm:$0xf]  ;;  %vm416_vm0 = vcmask 1043456   ;;  %v401_v6 = vlaneseq }
  0x17   : > { %833 = vset.pattern.permute.xlu0 %v914_v0  ;;  %765 = vmatprep.subr.mxu0 %v915_v1  ;;  %vm916_vm1 = vmmov 0   ;;  %v498_v4 = vld [vmem:[%s1091_s5] sm:$0xf]  ;;  %vm412_vm2 = vcmask 31744   ;;  %vm576_vm5 = vcmask 261120  }
  0x18   : > { %770 = vmatprep.subr.mxu1 %v915_v1  ;;  %s746_s22 = sshll.u32 %s375_s19, 3  ;;  %766 = vmatpush3.msk.msra.mxu0 %vm416_vm0, %v411_v2  ;;  %v402_v7 = vand.u32 127, %v401_v6  ;;  %v400_v13 = vld [vmem:[%s1087_s1] sm:$0xff] }
  0x19   : > { %767 = vmatprep.mubr.msk.f32.mxu0 %vm916_vm1, %v915_v1  ;;  %s391_s25 = scalar_lea.vmem %s1088_s2, %s746_s22  ;;  %s398_s12 = scalar_lea.vmem %s1089_s3, %s746_s22  ;;  %772 = vmatprep.mubr.msk.f32.mxu1 %vm916_vm1, %v915_v1  ;;  %v755_v31 = vld [vmem:[%s1092_s6] ss:$0 sm:$0xff] }
  0x1a   : > { %v403_v3 = vld [vmem:[%s391_s25] sm:$0xff]  ;;  %771 = vmatpush3.msk.msra.mxu1 %vm416_vm0, %v498_v4  ;;  %s380_s21 = scalar_lea.vmem %s1098_s0, %s746_s22  ;;  %s371_s22 = sand.u32 1, %s896_s28  }
  0x1b   : > { %405 = vperm.xlu0 %833, %v403_v3   ;;  %v491_v5 = vld [vmem:[%s398_s12] sm:$0xff]  ;;  %s745_s25 = sshll.u32 %s371_s22, 3  ;;  %s609_s0 = scalar_lea.sflag [#allocation3], %s371_s22 }
  0x1c   : > { %v399_v12 = vld [vmem:[%s380_s21] sm:$0xff]  ;;  %s373_s19 = scalar_lea.vmem [#allocation2], %s745_s25  ;;  %s840_s12 = sshll.u32 %s917_s11, 4  ;;  %s841_s12 = int_to_ptr.vmem [resolvable:$false] %s840_s12 }
  0x1d   : > { %v410_v14 = vadd.f32 %v400_v13, %v399_v12  ;;  %v756_v33 = vld [vmem:[%s1093_s7] ss:$0 sm:$0xff]  ;;  %s623_s20 = sshll.u32 %s373_s19, 4  ;;  %s842_s30 = scalar_lea.vmem %s841_s12, 256  ;;  %s624_s20 = int_to_ptr.vmem [resolvable:$true] %s623_s20 }
  0x1e   : > { %s836_s26 = scalar_lea.vmem %s624_s20, 128  ;;  %p843_p1 = scmp.lt.s32.totalorder %s624_s20, %s841_s12 }
  0x1f   : > { %493 = vperm.xlu0 %833, %v491_v5   ;;  %p837_p12 = scmp.ne.s32.totalorder %s624_s20, %s836_s26  ;;  %p844_p2 = scmp.lt.s32.totalorder %s842_s30, %s836_s26 }
  0x21   : > { %p838_p13 = pnand %p837_p12, %p1003_p4  ;;  %p845_p3 = por %p844_p2, %p843_p1 }
  0x23   : > { %p839_p0 = pneg %p838_p13 }
  0x25   : > { %p846_p5 = pnand %p845_p3, %p839_p0 }
  0x96   : > { %v406_v8 = vpop.permute.xlu0 %405 }
  0x97   : > { %vm407_vm3 = vcmp.eq.s32.totalorder %v406_v8, %v402_v7 }
  0x98   : > { %v749_v9 = vsel %vm407_vm3, 1.0, %v915_v1 }
  0x99   : > { %768 = vmatmul.mubr.msk.f32.vlgmr.msra.gmra.mxu0 %vm412_vm2, %v749_v9 }
  0x9a   : > { %v494_v10 = vpop.permute.xlu0 %493 }
  0x9b   : > { %vm495_vm4 = vcmp.eq.s32.totalorder %v494_v10, %v402_v7 }
  0x9c   : > { %v752_v11 = vsel %vm495_vm4, 1.0, %v915_v1 }
  0x9d   : > { %773 = vmatmul.mubr.msk.f32.vlgmr.msra.gmra.mxu1 %vm412_vm2, %v752_v11 }
 0x159   : > { %v486_v15 = vpop.f32.mrf.mxu0 }
 0x15a   : > { %v490_v17 = vadd.f32 %v486_v15, %v410_v14 }
 0x15b   : > { %v769_v16 = vpop.f32.mrf.mxu0 }
 0x15d   : > { %v571_v18 = vpop.f32.mrf.mxu1 }
 0x15e   : > { %v575_v19 = vadd.f32 %v571_v18, %v490_v17 }
 0x15f   : > { %v774_v20 = vpop.f32.mrf.mxu1 }
 0x160   : > { %v577_v21 = vsel %vm576_vm5, %v575_v19, 0.0 }
 0x161   : > { %578 = vadd.xlane.f32.xlu1 %v577_v21 }
 0x1ea   : > { %v579_v22 = vpop.xlane.xlu1 %578 }
 0x1eb   : > { %v581_v23 = vmul.f32 0.03125, %v579_v22 }
 0x1ed   : > { %v582_v24 = vsub.f32 %v575_v19, %v581_v23 }
 0x1ef   : > { %v583_v25 = vmul.f32 %v582_v24, %v582_v24 }
 0x1f1   : > { %v584_v26 = vsel %vm576_vm5, %v583_v25, 0.0 }
 0x1f2   : > { %585 = vadd.xlane.f32.xlu1 %v584_v26 }
 0x27b   : > { %v586_v27 = vpop.xlane.xlu1 %585 }
 0x27c   : > { %v587_v28 = vmul.f32 0.03125, %v586_v27 }
 0x27e   : > { %v588_v29 = vadd.f32 1e-12, %v587_v28 }
 0x280   : > { %834 = vrsqrt.f32 %v588_v29 }
 0x28d   : > { %v835_v30 = vpop.eup %834 }
 0x28e   : > { %v590_v32 = vmul.f32 %v835_v30, %v582_v24 }
 0x290   : > { %v598_v34 = vmul.f32 %v755_v31, %v590_v32 }
 0x292   : > { %v606_v35 = vadd.f32 %v756_v33, %v598_v34 }
 0x294   : > { %607 = vst.msk [vmem:[%s373_s19] sm:$0xff] %vm576_vm5, %v606_v35 }
 0x295   : > { %849 = shalt.err (!%p846_p5)
}
 0x296   : > { %s850_s25 = scalar_lea.hbm %s621_s24, 128  ;;  %s854_s16 = scalar_lea.hbm %s1094_s8, 256 }
 0x297   : > { %p851_p6 = scmp.ne.s32.totalorder %s621_s24, %s850_s25  ;;  %p855_p10 = scmp.lt.s32.totalorder %s621_s24, %s1094_s8 }
 0x298   : > { %p856_p11 = scmp.lt.s32.totalorder %s854_s16, %s850_s25 }
 0x299   : > { %p852_p7 = pnand %p851_p6, %p1003_p4 }
 0x29a   : > { %p857_p12 = por %p856_p11, %p855_p10 }
 0x29b   : > { %p853_p9 = pneg %p852_p7 }
 0x29d   : > { %p858_p13 = pnand %p857_p12, %p853_p9 }
 0x29f   : > { %861 = shalt.err (!%p858_p13)
}
 0x2a0   : > { %775 = dma.vmem_to_hbm [thread:$0]  (%p1003_p4), %s624_s20, 128, %s621_s24, %s609_s0  }
 0x2a1 PF: > { %p781_p0 = scmp.ge.s32.totalorder %s912_s10, 2  ;;  %s635_s23 = sand.u32 1, %s892_s27  }
 0x2a2   : > { %s636_s26 = scalar_lea.sflag [#allocation3], %s635_s23 }
 0x2a3   : > { %p778_p1 = pnand %p781_p0, %p1010_p8 }
 0x2a5   : > { %p779_p2 = pneg %p778_p1 }
 0x2a7   : > { %887 = dma.done.wait (%p779_p2), %s636_s26, 128  }
 0x2a8   : > { %889 = vsyncadd (%p779_p2), %s636_s26, 4294967168  ;;  %s21_s10 = sadd.s32 1, %s912_s10   ;;  %s1099_s27 = smov %s896_s28 }
 0x2a9   : > { %p18_p3 = scmp.ge.s32.totalorder %s21_s10, 4   ;;  %s1100_s28 = smov %s900_s29 }
 0x2aa   : > { %s1101_s29 = smov %s1016_s18  ;;  %s1102_s30 = smov %s908_s9 }
 0x2ab   : > { %s1103_s9 = smov %s1105_s13  ;;  %20 = sbr.rel (!%p18_p3) target bundleno = 6 (0x6), region = 96 }
 0x2b0   :  { %641 = vsyncpa [#allocation3], 1 }
 0x2b1   :  { %643 = vsyncpa [#allocation3 + $0x1], 1 }

</bundles_post_ra>
